<compile_context>
chip_gen: v7x
topology: tpu7x:2x2x1
jax: 0.10.0
libtpu: 0.0.40
codegen_flags: <defaults>
</compile_context>

<pallas_src>
import jax
import jax.numpy as jnp
from jax import lax
from jax.experimental import pallas as pl
from jax.experimental.pallas import tpu as pltpu

LANES = 128
SUBLANES = 8


def _cdiv(a, b):
    return -(-a // b)


def _round_up(a, b):
    return _cdiv(a, b) * b


def _sublane_multiple(dtype):
    # Second-minor tiling multiple by element width (f32:8, bf16:16, int8/fp8:32).
    return {4: 8, 2: 16, 1: 32}.get(jnp.dtype(dtype).itemsize, 8)


def _is_v7x():
    try:
        kind = jax.devices()[0].device_kind.lower()
    except Exception:
        return False
    return ("v7" in kind) or ("7x" in kind)


def _make_li_kernel(total_n, tile_rows, inner_steps):
    block_elems = tile_rows * LANES

    def kernel(x_ref, z_ref, r_ref, o_ref, acc_ref):
        c = pl.program_id(0)
        i = pl.program_id(1)

        @pl.when(i == 0)
        def _():
            acc_ref[...] = jnp.zeros_like(acc_ref)

        # Global element offset of this block (static grid arithmetic; int32 is
        # fine for < 2**31 elements).
        start = (c * inner_steps + i) * block_elems

        def accumulate(x, z, r):
            # Separate logs: strict parity with torch.log(x)+log(1-z)+log(1-r)
            # (fusing into log of a product can underflow for saturated
            # discriminator outputs).  HBM-bound, so the extra EUP op is free.
            term = jnp.log(x) + jnp.log(1.0 - z) + jnp.log(1.0 - r)
            # Fold row-groups into one (8, 128) vreg-group accumulator: pure VPU
            # vreg adds, no XLU, no large accumulator load/store stream.
            acc_ref[...] += jnp.sum(term.reshape(-1, SUBLANES, LANES), axis=0)

        @pl.when(start + block_elems <= total_n)  # fully in-bounds: no mask work
        def _():
            accumulate(x_ref[...].astype(jnp.float32),
                       z_ref[...].astype(jnp.float32),
                       r_ref[...].astype(jnp.float32))

        @pl.when(start + block_elems > total_n)   # edge / fully-masked block
        def _():
            row = lax.broadcasted_iota(jnp.int32, (tile_rows, LANES), 0)
            col = lax.broadcasted_iota(jnp.int32, (tile_rows, LANES), 1)
            valid = (start + row * LANES + col) < total_n
            # Mask the *inputs* (x->1, z->0, r->0) before the logs so garbage
            # lanes can never produce NaN/Inf intermediates.
            x = jnp.where(valid, x_ref[...].astype(jnp.float32), 1.0)
            z = jnp.where(valid, z_ref[...].astype(jnp.float32), 0.0)
            r = jnp.where(valid, r_ref[...].astype(jnp.float32), 0.0)
            accumulate(x, z, r)

        @pl.when(i == pl.num_programs(1) - 1)
        def _():
            # Lane-dense (8, 128) partial per grid-partial; the cross-lane
            # reduce happens on the tiny output in the wrapper.
            o_ref[...] = acc_ref[...]

    return kernel


def li_loss(d_i_x, d_i_dec_z_c, d_i_x_rec, *,
            max_tile_rows=4096, num_partials=None, min_pallas_elems=1 << 16):
    """Pallas implementation of
       -mean(log(d_i_x) + log(1 - d_i_dec_z_c) + log(1 - d_i_x_rec))."""
    assert d_i_x.shape == d_i_dec_z_c.shape == d_i_x_rec.shape
    total_n = d_i_x.size

    # Fast path: for small discriminator maps the fused XLA elementwise+reduce
    # beats any kernel launch / grid overhead.
    if total_n < max(min_pallas_elems, 1):
        x = d_i_x.astype(jnp.float32)
        z = d_i_dec_z_c.astype(jnp.float32)
        r = d_i_x_rec.astype(jnp.float32)
        return -jnp.mean(jnp.log(x) + jnp.log(1.0 - z) + jnp.log(1.0 - r))

    is_v7x = _is_v7x()
    if num_partials is None:
        # v5e/v6e have a single TensorCore: a >1 leading split is pure overhead.
        num_partials = 2 if is_v7x else 1
    num_partials = max(1, int(num_partials))

    sub = max(_sublane_multiple(a.dtype) for a in (d_i_x, d_i_dec_z_c, d_i_x_rec))

    # Rectangular (rows, 128) view.  Zero-copy (pure reshape) whenever total_n
    # is lane-aligned; only non-128-multiple sizes pay a (<=127-element) pad
    # copy, which is unavoidable for a 2-D view.  Pad values are irrelevant:
    # the in-kernel mask excludes indices >= total_n before the logs.
    padded_n = _round_up(total_n, LANES)
    rows = padded_n // LANES

    def prep(a):
        flat = a.reshape(-1)                      # free for contiguous inputs
        if padded_n != total_n:
            flat = jnp.pad(flat, (0, padded_n - total_n))
        return flat.reshape(rows, LANES)

    x2, z2, r2 = prep(d_i_x), prep(d_i_dec_z_c), prep(d_i_x_rec)

    # Large row tiles amortize the ~0.35us per-grid-step boundary; edge blocks
    # are masked in-kernel, so there is no chunk-granularity padding anymore.
    # VMEM budget @4096 rows: 3 inputs x 2 bufs x 2 MiB = 12 MiB (18 MiB with
    # Buffered(3)) + a 4 KiB accumulator -- safe under 32 MiB on every gen.
    tile_rows = min(max_tile_rows, _round_up(_cdiv(rows, num_partials), sub))
    tile_rows = max(tile_rows, sub)
    n_blocks = _cdiv(rows, tile_rows)
    inner_steps = _cdiv(n_blocks, num_partials)
    last_block = n_blocks - 1

    def in_map(c, i):
        # Clamp so trailing (fully masked) grid steps re-read a valid block
        # instead of indexing past the array.
        return (jnp.minimum(c * inner_steps + i, last_block), 0)

    # v7x: ~3.2 TB/s HBM + 2 TCs -> deepen input buffering when the reduction is
    # long enough to benefit (never triggers on the tiny demo shapes).
    if is_v7x and inner_steps >= 3:
        in_spec = pl.BlockSpec((tile_rows, LANES), in_map,
                               pipeline_mode=pl.Buffered(3))
    else:
        in_spec = pl.BlockSpec((tile_rows, LANES), in_map)

    kernel = _make_li_kernel(total_n, tile_rows, inner_steps)

    partials = pl.pallas_call(
        kernel,
        out_shape=jax.ShapeDtypeStruct((num_partials, SUBLANES, LANES),
                                       jnp.float32),
        grid_spec=pltpu.PrefetchScalarGridSpec(
            num_scalar_prefetch=0,
            grid=(num_partials, inner_steps),
            in_specs=[in_spec, in_spec, in_spec],
            out_specs=pl.BlockSpec((None, SUBLANES, LANES),
                                   lambda c, i: (c, 0, 0)),
            scratch_shapes=[pltpu.VMEM((SUBLANES, LANES), jnp.float32)],
        ),
        compiler_params=pltpu.CompilerParams(
            # Leading axis shards across TensorCores on v7x; inner axis is the
            # sequential reduction.
            dimension_semantics=("parallel", "arbitrary"),
            vmem_limit_bytes=32 * 1024 * 1024,
        ),
    )(x2, z2, r2)

    return -(jnp.sum(partials) / jnp.float32(total_n))


if __name__ == "__main__":
    key = jax.random.PRNGKey(0)
    k1, k2, k3 = jax.random.split(key, 3)

    # Discriminator-style probability maps, NCHW, values strictly in (0, 1).
    shape = (2, 4, 16, 16)
    d_i_x = jax.nn.sigmoid(jax.random.normal(k1, shape, dtype=jnp.float32))
    d_i_dec_z_c = jax.nn.sigmoid(jax.random.normal(k2, shape, dtype=jnp.float32))
    d_i_x_rec = jax.nn.sigmoid(jax.random.normal(k3, shape, dtype=jnp.float32))

    # Reference (plain JAX, mirrors the PyTorch forward).
    ref = -jnp.mean(jnp.log(d_i_x) + jnp.log(1.0 - d_i_dec_z_c)
                    + jnp.log(1.0 - d_i_x_rec))

    # Force the Pallas path so the kernel is exercised at this small demo size.
    loss = li_loss(d_i_x, d_i_dec_z_c, d_i_x_rec, min_pallas_elems=0)
    loss = jax.block_until_ready(loss)
    assert jnp.allclose(loss, ref, rtol=1e-5, atol=1e-5), (loss, ref)

    # Default behaviour (tiny inputs route through the fused-XLA fast path).
    loss_fast = jax.block_until_ready(li_loss(d_i_x, d_i_dec_z_c, d_i_x_rec))
    assert jnp.allclose(loss_fast, ref, rtol=1e-5, atol=1e-5), (loss_fast, ref)

    print("KERNEL_OK")
</pallas_src>

<mosaic_0001>
module attributes {stable_mosaic.version = 11 : i64} {
  func.func @kernel(%arg0: i32, %arg1: i32, %arg2: memref<16x128xf32, #tpu.memory_space<vmem>>, %arg3: memref<16x128xf32, #tpu.memory_space<vmem>>, %arg4: memref<16x128xf32, #tpu.memory_space<vmem>>, %arg5: memref<1x8x128xf32, #tpu.memory_space<vmem>>, %arg6: memref<8x128xf32, #tpu.memory_space<vmem>>) attributes {dimension_semantics = [#tpu.dimension_semantics<parallel>, #tpu.dimension_semantics<arbitrary>], iteration_bounds = array<i64: 1, 1>, scalar_prefetch = 0 : i64, scratch_operands = 1 : i64, tpu.core_type = #tpu.core_type<tc>, window_params = [{transform_indices = @transform_0, window_bounds = array<i64: 16, 128>}, {transform_indices = @transform_1, window_bounds = array<i64: 16, 128>}, {transform_indices = @transform_2, window_bounds = array<i64: 16, 128>}, {transform_indices = @transform_3, window_bounds = array<i64: 1, 8, 128>}]} {
    %c0_i32 = arith.constant 0 : i32
    %0 = arith.cmpi eq, %arg1, %c0_i32 : i32
    %1 = arith.extui %0 : i1 to i32
    %c0_i32_0 = arith.constant 0 : i32
    %2 = arith.cmpi ne, %1, %c0_i32_0 : i32
    scf.if %2 {
      %cst = arith.constant 0.000000e+00 : f32
      %17 = vector.broadcast %cst : f32 to vector<8x128xf32>
      %c0 = arith.constant 0 : index
      %c0_9 = arith.constant 0 : index
      %18 = vector.load %arg6[%c0, %c0_9] : memref<8x128xf32, #tpu.memory_space<vmem>>, vector<8x128xf32>
      tpu.vector_store %arg6[%c0, %c0_9], %17 {strides = array<i32>} : memref<8x128xf32, #tpu.memory_space<vmem>>, vector<8x128xf32>,
    } else {
    }
    %c1_i32 = arith.constant 1 : i32
    %3 = arith.muli %arg0, %c1_i32 : i32
    %4 = arith.addi %3, %arg1 : i32
    %c2048_i32 = arith.constant 2048 : i32
    %5 = arith.muli %4, %c2048_i32 : i32
    %c2048_i32_1 = arith.constant 2048 : i32
    %6 = arith.addi %5, %c2048_i32_1 : i32
    %c2048_i32_2 = arith.constant 2048 : i32
    %7 = arith.cmpi sle, %6, %c2048_i32_2 : i32
    %8 = arith.extui %7 : i1 to i32
    %c0_i32_3 = arith.constant 0 : i32
    %9 = arith.cmpi ne, %8, %c0_i32_3 : i32
    scf.if %9 {
      %c0 = arith.constant 0 : index
      %c0_9 = arith.constant 0 : index
      %17 = vector.load %arg2[%c0, %c0_9] : memref<16x128xf32, #tpu.memory_space<vmem>>, vector<16x128xf32>
      %c0_10 = arith.constant 0 : index
      %c0_11 = arith.constant 0 : index
      %18 = vector.load %arg3[%c0_10, %c0_11] : memref<16x128xf32, #tpu.memory_space<vmem>>, vector<16x128xf32>
      %c0_12 = arith.constant 0 : index
      %c0_13 = arith.constant 0 : index
      %19 = vector.load %arg4[%c0_12, %c0_13] : memref<16x128xf32, #tpu.memory_space<vmem>>, vector<16x128xf32>
      %20 = math.log %17 : vector<16x128xf32>
      %cst = arith.constant 1.000000e+00 : f32
      %21 = vector.broadcast %cst : f32 to vector<16x128xf32>
      %22 = arith.subf %21, %18 : vector<16x128xf32>
      %23 = math.log %22 : vector<16x128xf32>
      %24 = arith.addf %20, %23 : vector<16x128xf32>
      %cst_14 = arith.constant 1.000000e+00 : f32
      %25 = vector.broadcast %cst_14 : f32 to vector<16x128xf32>
      %26 = arith.subf %25, %19 : vector<16x128xf32>
      %27 = math.log %26 : vector<16x128xf32>
      %28 = arith.addf %24, %27 : vector<16x128xf32>
      %c0_15 = arith.constant 0 : index
      %c0_16 = arith.constant 0 : index
      %29 = vector.load %arg6[%c0_15, %c0_16] : memref<8x128xf32, #tpu.memory_space<vmem>>, vector<8x128xf32>
      %30 = vector.shape_cast %28 : vector<16x128xf32> to vector<2x8x128xf32>
      %cst_17 = arith.constant dense<0.000000e+00> : vector<8x128xf32>
      %31 = vector.multi_reduction <add>, %30, %cst_17 [0] : vector<2x8x128xf32> to vector<8x128xf32>
      %32 = arith.addf %29, %31 : vector<8x128xf32>
      %c0_18 = arith.constant 0 : index
      %c0_19 = arith.constant 0 : index
      %33 = vector.load %arg6[%c0_18, %c0_19] : memref<8x128xf32, #tpu.memory_space<vmem>>, vector<8x128xf32>
      tpu.vector_store %arg6[%c0_18, %c0_19], %32 {strides = array<i32>} : memref<8x128xf32, #tpu.memory_space<vmem>>, vector<8x128xf32>,
    } else {
    }
    %c2048_i32_4 = arith.constant 2048 : i32
    %10 = arith.addi %5, %c2048_i32_4 : i32
    %c2048_i32_5 = arith.constant 2048 : i32
    %11 = arith.cmpi sgt, %10, %c2048_i32_5 : i32
    %12 = arith.extui %11 : i1 to i32
    %c0_i32_6 = arith.constant 0 : i32
    %13 = arith.cmpi ne, %12, %c0_i32_6 : i32
    scf.if %13 {
      %17 = tpu.iota {dimensions = array<i32: 0>} : vector<16x128xi32>
      %18 = tpu.iota {dimensions = array<i32: 1>} : vector<16x128xi32>
      %c128_i32 = arith.constant 128 : i32
      %19 = vector.broadcast %c128_i32 : i32 to vector<16x128xi32>
      %20 = arith.muli %17, %19 : vector<16x128xi32>
      %21 = vector.broadcast %5 : i32 to vector<16x128xi32>
      %22 = arith.addi %21, %20 : vector<16x128xi32>
      %23 = arith.addi %22, %18 : vector<16x128xi32>
      %c2048_i32_9 = arith.constant 2048 : i32
      %24 = vector.broadcast %c2048_i32_9 : i32 to vector<16x128xi32>
      %25 = arith.cmpi slt, %23, %24 : vector<16x128xi32>
      %c0 = arith.constant 0 : index
      %c0_10 = arith.constant 0 : index
      %26 = vector.load %arg2[%c0, %c0_10] : memref<16x128xf32, #tpu.memory_space<vmem>>, vector<16x128xf32>
      %cst = arith.constant 1.000000e+00 : f32
      %27 = vector.broadcast %cst : f32 to vector<16x128xf32>
      %28 = arith.select %25, %26, %27 : vector<16x128xi1>, vector<16x128xf32>
      %c0_11 = arith.constant 0 : index
      %c0_12 = arith.constant 0 : index
      %29 = vector.load %arg3[%c0_11, %c0_12] : memref<16x128xf32, #tpu.memory_space<vmem>>, vector<16x128xf32>
      %cst_13 = arith.constant 0.000000e+00 : f32
      %30 = vector.broadcast %cst_13 : f32 to vector<16x128xf32>
      %31 = arith.select %25, %29, %30 : vector<16x128xi1>, vector<16x128xf32>
      %c0_14 = arith.constant 0 : index
      %c0_15 = arith.constant 0 : index
      %32 = vector.load %arg4[%c0_14, %c0_15] : memref<16x128xf32, #tpu.memory_space<vmem>>, vector<16x128xf32>
      %cst_16 = arith.constant 0.000000e+00 : f32
      %33 = vector.broadcast %cst_16 : f32 to vector<16x128xf32>
      %34 = arith.select %25, %32, %33 : vector<16x128xi1>, vector<16x128xf32>
      %35 = math.log %28 : vector<16x128xf32>
      %cst_17 = arith.constant 1.000000e+00 : f32
      %36 = vector.broadcast %cst_17 : f32 to vector<16x128xf32>
      %37 = arith.subf %36, %31 : vector<16x128xf32>
      %38 = math.log %37 : vector<16x128xf32>
      %39 = arith.addf %35, %38 : vector<16x128xf32>
      %cst_18 = arith.constant 1.000000e+00 : f32
      %40 = vector.broadcast %cst_18 : f32 to vector<16x128xf32>
      %41 = arith.subf %40, %34 : vector<16x128xf32>
      %42 = math.log %41 : vector<16x128xf32>
      %43 = arith.addf %39, %42 : vector<16x128xf32>
      %c0_19 = arith.constant 0 : index
      %c0_20 = arith.constant 0 : index
      %44 = vector.load %arg6[%c0_19, %c0_20] : memref<8x128xf32, #tpu.memory_space<vmem>>, vector<8x128xf32>
      %45 = vector.shape_cast %43 : vector<16x128xf32> to vector<2x8x128xf32>
      %cst_21 = arith.constant dense<0.000000e+00> : vector<8x128xf32>
      %46 = vector.multi_reduction <add>, %45, %cst_21 [0] : vector<2x8x128xf32> to vector<8x128xf32>
      %47 = arith.addf %44, %46 : vector<8x128xf32>
      %c0_22 = arith.constant 0 : index
      %c0_23 = arith.constant 0 : index
      %48 = vector.load %arg6[%c0_22, %c0_23] : memref<8x128xf32, #tpu.memory_space<vmem>>, vector<8x128xf32>
      tpu.vector_store %arg6[%c0_22, %c0_23], %47 {strides = array<i32>} : memref<8x128xf32, #tpu.memory_space<vmem>>, vector<8x128xf32>,
    } else {
    }
    %c0_i32_7 = arith.constant 0 : i32
    %14 = arith.cmpi eq, %arg1, %c0_i32_7 : i32
    %15 = arith.extui %14 : i1 to i32
    %c0_i32_8 = arith.constant 0 : i32
    %16 = arith.cmpi ne, %15, %c0_i32_8 : i32
    scf.if %16 {
      %c0 = arith.constant 0 : index
      %c0_9 = arith.constant 0 : index
      %17 = vector.load %arg6[%c0, %c0_9] : memref<8x128xf32, #tpu.memory_space<vmem>>, vector<8x128xf32>
      %c0_10 = arith.constant 0 : index
      %c0_11 = arith.constant 0 : index
      %c0_12 = arith.constant 0 : index
      %18 = vector.load %arg5[%c0_10, %c0_11, %c0_12] : memref<1x8x128xf32, #tpu.memory_space<vmem>>, vector<1x8x128xf32>
      %19 = vector.shape_cast %18 : vector<1x8x128xf32> to vector<8x128xf32>
      %20 = vector.shape_cast %17 : vector<8x128xf32> to vector<1x8x128xf32>
      tpu.vector_store %arg5[%c0_10, %c0_11, %c0_12], %20 {strides = array<i32>} : memref<1x8x128xf32, #tpu.memory_space<vmem>>, vector<1x8x128xf32>,
    } else {
    }
    return
  }
  func.func @transform_0(%arg0: i32, %arg1: i32) -> (i32, i32) {
    %c1_i32 = arith.constant 1 : i32
    %0 = arith.muli %arg0, %c1_i32 : i32
    %1 = arith.addi %0, %arg1 : i32
    %c0_i32 = arith.constant 0 : i32
    %2 = arith.minsi %1, %c0_i32 : i32
    %c0_i32_0 = arith.constant 0 : i32
    %c0_i32_1 = arith.constant 0 : i32
    return %2, %c0_i32_0 : i32, i32
  }
  func.func @transform_1(%arg0: i32, %arg1: i32) -> (i32, i32) {
    %c1_i32 = arith.constant 1 : i32
    %0 = arith.muli %arg0, %c1_i32 : i32
    %1 = arith.addi %0, %arg1 : i32
    %c0_i32 = arith.constant 0 : i32
    %2 = arith.minsi %1, %c0_i32 : i32
    %c0_i32_0 = arith.constant 0 : i32
    %c0_i32_1 = arith.constant 0 : i32
    return %2, %c0_i32_0 : i32, i32
  }
  func.func @transform_2(%arg0: i32, %arg1: i32) -> (i32, i32) {
    %c1_i32 = arith.constant 1 : i32
    %0 = arith.muli %arg0, %c1_i32 : i32
    %1 = arith.addi %0, %arg1 : i32
    %c0_i32 = arith.constant 0 : i32
    %2 = arith.minsi %1, %c0_i32 : i32
    %c0_i32_0 = arith.constant 0 : i32
    %c0_i32_1 = arith.constant 0 : i32
    return %2, %c0_i32_0 : i32, i32
  }
  func.func @transform_3(%arg0: i32, %arg1: i32) -> (i32, i32, i32) {
    %c0_i32 = arith.constant 0 : i32
    %c0_i32_0 = arith.constant 0 : i32
    %c0_i32_1 = arith.constant 0 : i32
    return %arg0, %c0_i32, %c0_i32_0 : i32, i32, i32
  }
}

</mosaic_0001>

<bundles_post_ra>
// kernel: tpu_custom_call.1
= control target key start
LH: loop header
LB: loop body
LE: loop exit
PB: predicated region body
PF: predicated region fallthrough
CT: control target
= control target key end

     0   :  { %8 = vsyncpa [#allocation4], 0  ;;  %s411_s0 = inlined_call_operand.hbm [shape: f32[16,128], index: 0, kind: input, shape index: {}]   ;;  %s412_s1 = inlined_call_operand.hbm [shape: f32[16,128], index: 1, kind: input, shape index: {}]   ;;  %s413_s2 = inlined_call_operand.hbm [shape: f32[16,128], index: 2, kind: input, shape index: {}]   ;;  %s414_s3 = inlined_call_operand.hbm [shape: f32[1,8,128], index: 3, kind: output, shape index: {}]  }
   0x1   :  { %9 = vsyncpa [#allocation7], 0 }
   0x2   :  { %10 = vsyncpa [#allocation5], 0  ;;  %s321_s12 = smov [#allocation6]   ;;  %s322_s14 = smov [#allocation3]  }
   0x3   :  { %s40_s13 = sshll.u32 %s321_s12, 4  ;;  %s22_s15 = sshll.u32 %s322_s14, 4  ;;  %s41_s13 = int_to_ptr.vmem [resolvable:$true] %s40_s13  ;;  %s347_s15 = int_to_ptr.vmem [resolvable:$true] %s22_s15 }
   0x4   :  { %s227_s18 = scalar_lea.hbm %s412_s1, 256 }
   0x5   :  { %p228_p0 = scmp.ne.s32.totalorder %s412_s1, %s227_s18  ;;  %p231_p1 = scmp.lt.u32.totalorder %s227_s18, %s412_s1 }
   0x7   :  { %p233_p2 = pnand %p231_p1, %p228_p0 }
   0x9   :  { %236 = shalt.err (!%p233_p2)
}
   0xa   :  { %s237_s23 = scalar_lea.vmem %s41_s13, 256  ;;  %p242_p4 = scmp.lt.s32.totalorder %s41_s13, %s41_s13 }
   0xb   :  { %p238_p3 = scmp.ne.s32.totalorder %s41_s13, %s237_s23  ;;  %p243_p5 = scmp.lt.s32.totalorder %s237_s23, %s237_s23 }
   0xd   :  { %p244_p6 = por %p243_p5, %p242_p4 }
   0xf   :  { %p245_p7 = pnand %p244_p6, %p238_p3 }
  0x11   :  { %248 = shalt.err (!%p245_p7)
}
  0x12   :  { %s323_s24 = smov 128   ;;  %s324_s25 = smov 8  }
  0x13   :  { %46 = dma.hbm_to_vmem [thread:$0]  %s412_s1, 256, %s41_s13, [#allocation7], %s323_s24, %s323_s24, %s324_s25  }
  0x14   :  { %s249_s30 = scalar_lea.hbm %s411_s0, 256 }
  0x15   :  { %p250_p8 = scmp.ne.s32.totalorder %s411_s0, %s249_s30  ;;  %p253_p9 = scmp.lt.u32.totalorder %s249_s30, %s411_s0 }
  0x17   :  { %p255_p10 = pnand %p253_p9, %p250_p8 }
  0x19   :  { %258 = shalt.err (!%p255_p10)
}
  0x1a   :  { %s259_s8 = scalar_lea.vmem %s347_s15, 256  ;;  %p264_p12 = scmp.lt.s32.totalorder %s347_s15, %s347_s15 }
  0x1b   :  { %p260_p11 = scmp.ne.s32.totalorder %s347_s15, %s259_s8  ;;  %p265_p13 = scmp.lt.s32.totalorder %s259_s8, %s259_s8 }
  0x1d   :  { %p266_p0 = por %p265_p13, %p264_p12 }
  0x1f   :  { %p267_p1 = pnand %p266_p0, %p260_p11 }
  0x21   :  { %270 = shalt.err (!%p267_p1)
}
  0x22   :  { %28 = dma.hbm_to_vmem [thread:$0]  %s411_s0, 256, %s347_s15, [#allocation4], %s323_s24, %s323_s24, %s324_s25  }
  0x23   :  { %s325_s10 = smov [#allocation8]   ;;  %s271_s14 = scalar_lea.hbm %s413_s2, 256 }
  0x24   :  { %s58_s11 = sshll.u32 %s325_s10, 4  ;;  %p272_p2 = scmp.ne.s32.totalorder %s413_s2, %s271_s14  ;;  %s59_s11 = int_to_ptr.vmem [resolvable:$true] %s58_s11 }
  0x25   :  { %p275_p3 = scmp.lt.u32.totalorder %s271_s14, %s413_s2 }
  0x27   :  { %p277_p4 = pnand %p275_p3, %p272_p2 }
  0x29   :  { %280 = shalt.err (!%p277_p4)
}
  0x2a   :  { %s281_s20 = scalar_lea.vmem %s59_s11, 256  ;;  %p286_p6 = scmp.lt.s32.totalorder %s59_s11, %s59_s11 }
  0x2b   :  { %p282_p5 = scmp.ne.s32.totalorder %s59_s11, %s281_s20  ;;  %p287_p7 = scmp.lt.s32.totalorder %s281_s20, %s281_s20 }
  0x2d   :  { %p288_p8 = por %p287_p7, %p286_p6 }
  0x2f   :  { %p289_p9 = pnand %p288_p8, %p282_p5 }
  0x31   :  { %292 = shalt.err (!%p289_p9)
}
  0x32   :  { %64 = dma.hbm_to_vmem [thread:$0]  %s413_s2, 256, %s59_s11, [#allocation7], %s323_s24, %s323_s24, %s324_s25  }
  0x33   :  { %315 = dma.done.wait [#allocation4], 256  }
  0x34   :  { %316 = vsyncadd [#allocation4], 4294967040 }
  0x35   :  { %317 = dma.done.wait [#allocation7], 512  }
  0x36   :  { %318 = vsyncadd [#allocation7], 4294966784  ;;  %v98_v0 = vld [vmem:[#allocation3] sm:$0xff]  ;;  %v99_v1 = vld [vmem:[#allocation3 + $0x8] sm:$0xff]  ;;  %s326_s2 = smov [#allocation9]  }
  0x37   :  { %v100_v2 = vld [vmem:[#allocation6] sm:$0xff]  ;;  %v101_v3 = vld [vmem:[#allocation6 + $0x8] sm:$0xff]  ;;  %v102_v4 = vld [vmem:[#allocation8] sm:$0xff]  ;;  %215 = vlog2.f32 %v98_v0  ;;  %s193_s21 = sshll.u32 %s326_s2, 4  ;;  %s194_s21 = int_to_ptr.vmem [resolvable:$true] %s193_s21 }
  0x38   :  { %v103_v5 = vld [vmem:[#allocation8 + $0x8] sm:$0xff]  ;;  %v108_v6 = vsub.f32 1.0, %v100_v2  ;;  %217 = vlog2.f32 %v99_v1  ;;  %v109_v7 = vsub.f32 1.0, %v101_v3  ;;  %v116_v8 = vsub.f32 1.0, %v102_v4  ;;  %s293_s22 = scalar_lea.vmem %s194_s21, 128  ;;  %p298_p11 = scmp.lt.s32.totalorder %s194_s21, %s194_s21 }
  0x39   :  { %v117_v9 = vsub.f32 1.0, %v103_v5  ;;  %p294_p10 = scmp.ne.s32.totalorder %s194_s21, %s293_s22  ;;  %p299_p12 = scmp.lt.s32.totalorder %s293_s22, %s293_s22 }
  0x3a   :  { %219 = vlog2.f32 %v108_v6 }
  0x3b   :  { %221 = vlog2.f32 %v109_v7  ;;  %p300_p13 = por %p299_p12, %p298_p11 }
  0x3c   :  { %223 = vlog2.f32 %v116_v8 }
  0x3d   :  { %225 = vlog2.f32 %v117_v9  ;;  %p301_p0 = pnand %p300_p13, %p294_p10 }
  0x41   :  { %v216_v10 = vpop.eup %215 }
  0x42   :  { %v218_v11 = vpop.eup %217  ;;  %v105_v12 = vmul.f32 0.6931472, %v216_v10 }
  0x43   :  { %v107_v14 = vmul.f32 0.6931472, %v218_v11 }
  0x44   :  { %v220_v13 = vpop.eup %219 }
  0x45   :  { %v222_v15 = vpop.eup %221  ;;  %v111_v16 = vmul.f32 0.6931472, %v220_v13 }
  0x46   :  { %v224_v17 = vpop.eup %223  ;;  %v113_v18 = vmul.f32 0.6931472, %v222_v15 }
  0x47   :  { %v226_v19 = vpop.eup %225  ;;  %v114_v20 = vadd.f32 %v111_v16, %v105_v12  ;;  %v119_v21 = vmul.f32 0.6931472, %v224_v17 }
  0x48   :  { %v115_v22 = vadd.f32 %v113_v18, %v107_v14  ;;  %v121_v23 = vmul.f32 0.6931472, %v226_v19 }
  0x49   :  { %v122_v24 = vadd.f32 %v119_v21, %v114_v20 }
  0x4a   :  { %v123_v25 = vadd.f32 %v121_v23, %v115_v22 }
  0x4c   :  { %v125_v26 = vadd.f32 %v123_v25, %v122_v24 }
  0x4e   :  { %186 = vst [vmem:[#allocation9] sm:$0xff] %v125_v26 }
  0x4f   :  { %304 = shalt.err (!%p301_p0)
}
  0x50   :  { %s305_s25 = scalar_lea.hbm %s414_s3, 128 }
  0x51   :  { %p306_p1 = scmp.ne.s32.totalorder %s414_s3, %s305_s25  ;;  %p309_p2 = scmp.lt.u32.totalorder %s305_s25, %s414_s3 }
  0x53   :  { %p311_p3 = pnand %p309_p2, %p306_p1 }
  0x55   :  { %314 = shalt.err (!%p311_p3)
}
  0x56   :  { %196 = dma.vmem_to_hbm [thread:$0]  %s194_s21, 128, %s414_s3, [#allocation5]  }
  0x57   :  { %319 = dma.done.wait [#allocation5], 128  }
  0x58   :  { %320 = vsyncadd [#allocation5], 4294967168 }
  0x59   :  { %200 = vsyncpa [#allocation4], 1 }
  0x5a   :  { %201 = vsyncpa [#allocation7], 1 }
  0x5b   :  { %202 = vsyncpa [#allocation5], 1 }

</bundles_post_ra>
